<compile_context>
chip_gen: v7x
topology: tpu7x:2x2x1
jax: 0.10.0
libtpu: 0.0.40
codegen_flags: <defaults>
</compile_context>

<pallas_src>
import functools

import jax
import jax.numpy as jnp
from jax.experimental import pallas as pl
from jax.experimental.pallas import tpu as pltpu

# TODO(synk): self.model.encode_video (pretrained text-video encoder) is not
# reproduced here; the kernel consumes its output features directly.

INPUT_DIM = 128          # model.text_image_encoder.universal_projection_encoder.input_dim
NUM_CLASSES = 10
HIDDEN = [512, 256, 128, 64, 32]
BN_EPS = 1e-5
LANE = 128               # TPU lane width


def _round_up(n, m):
    return ((n + m - 1) // m) * m


# --------------------------------------------------------------------------
# Kernel: one batch tile of the whole MLP head (weights already BN-folded,
# lane-padded and bf16; everything fits comfortably in VMEM).
# --------------------------------------------------------------------------
def _classifier_kernel(x_ref,
                       w1, b1, w2, b2, w3, b3, w4, b4, w5, b5, w6, b6,
                       out_ref, *, bf16_epilogue):
    # Hidden-layer epilogue dtype: bf16 on v6e/v7x (native bf16 VALU), f32 on
    # v5e (no bf16 VALU -> emulation would lose).
    hid_dtype = jnp.bfloat16 if bf16_epilogue else jnp.float32

    def hidden(h, w_ref, b_ref):
        # bf16 operands on the MXU, f32 accumulation; one cast, then bias+ReLU
        # in the epilogue dtype.
        z = jnp.dot(h, w_ref[...], preferred_element_type=jnp.float32)
        z = z.astype(hid_dtype) + b_ref[...].astype(hid_dtype)
        return jnp.maximum(z, 0).astype(jnp.bfloat16)

    h = x_ref[...]                       # (TB, 128) bf16
    h = hidden(h, w1, b1)
    h = hidden(h, w2, b2)
    h = hidden(h, w3, b3)
    h = hidden(h, w4, b4)
    h = hidden(h, w5, b5)
    # Final layer: keep f32 accumulation + f32 bias, round once to bf16 output.
    z = jnp.dot(h, w6[...], preferred_element_type=jnp.float32) + b6[...]
    out_ref[...] = z.astype(out_ref.dtype)


# --------------------------------------------------------------------------
# Parameter construction (PyTorch-like) and host-side preparation.
# --------------------------------------------------------------------------
def init_params(key, input_dim=INPUT_DIM, num_classes=NUM_CLASSES):
    """Deterministic parameter construction (PyTorch-like uniform init)."""
    dims = [input_dim] + HIDDEN + [num_classes]
    params = []
    for li in range(len(dims) - 1):
        d_in, d_out = dims[li], dims[li + 1]
        key, kw, kb, kg, kbe, km, kv = jax.random.split(key, 7)
        bound = 1.0 / (d_in ** 0.5)
        w = jax.random.uniform(kw, (d_in, d_out), jnp.float32, -bound, bound)
        b = jax.random.uniform(kb, (1, d_out), jnp.float32, -bound, bound)
        layer = {"w": w, "b": b}
        if li < len(HIDDEN):  # hidden layers also carry BatchNorm params
            gamma = 1.0 + 0.1 * jax.random.normal(kg, (1, d_out), jnp.float32)
            beta = 0.1 * jax.random.normal(kbe, (1, d_out), jnp.float32)
            running_mean = 0.1 * jax.random.normal(km, (1, d_out), jnp.float32)
            running_var = 1.0 + 0.1 * jax.random.uniform(kv, (1, d_out), jnp.float32)
            layer.update(gamma=gamma, beta=beta,
                         running_mean=running_mean, running_var=running_var)
        params.append(layer)
    return params


def fold_bn(layer):
    """Eval-mode BatchNorm1d as per-feature scale/shift."""
    scale = layer["gamma"] * jax.lax.rsqrt(layer["running_var"] + BN_EPS)
    shift = layer["beta"] - layer["running_mean"] * scale
    return scale, shift


def prepare_kernel_params(params):
    """Fold BN into the NEXT Linear (exact: no nonlinearity between BN and the
    next Linear), zero-pad every feature width up to a multiple of 128 lanes,
    and cast weights to bf16 (biases stay f32).  Call ONCE, outside jit, and
    pass the returned flat list to linear_classifier_forward."""
    flat = []
    prev_scale, prev_shift = None, None
    n_layers = len(params)
    for k, layer in enumerate(params):
        w, b = layer["w"], layer["b"]
        if prev_scale is not None:
            # Linear(BN(u)) == u @ (scale^T * W) + (shift @ W + b)
            b = b + prev_shift @ w
            w = prev_scale.reshape(-1, 1) * w
        d_in, d_out = w.shape
        pad_in, pad_out = _round_up(d_in, LANE), _round_up(d_out, LANE)
        w = jnp.pad(w, ((0, pad_in - d_in), (0, pad_out - d_out)))
        b = jnp.pad(b, ((0, 0), (0, pad_out - d_out)))
        flat += [w.astype(jnp.bfloat16), b.astype(jnp.float32)]
        if k < n_layers - 1:              # only hidden layers carry BN params
            prev_scale, prev_shift = fold_bn(layer)
    return tuple(flat)


# --------------------------------------------------------------------------
# Wrapper: batch-tiled pallas_call.
# --------------------------------------------------------------------------
@functools.partial(jax.jit,
                   static_argnames=("num_classes", "block_rows", "bf16_epilogue"))
def linear_classifier_forward(features, flat_params, *, num_classes=NUM_CLASSES,
                              block_rows=None, bf16_epilogue=True):
    """features: [B, INPUT_DIM] -> logits [B, num_classes] f32.

    `flat_params` is the output of prepare_kernel_params (BN-folded, padded,
    bf16 weights).  Set bf16_epilogue=False on v5e (no bf16 VALU)."""
    B, D = features.shape
    flat = list(flat_params)
    d_pad = _round_up(D, LANE)
    out_pad = flat[-1].shape[1]           # padded logits width (128)

    if block_rows is None:
        # 512-row tiles amortize the ~0.35us/step pipeline overhead and the
        # per-step weight pushes; for smaller batches shrink the tile so the
        # grid has >=2 steps (v7x dual-TC sharding), 8-row sublane granule.
        tb = min(512, _round_up(max((B + 1) // 2, 8), 8))
    else:
        tb = block_rows
    b_pad = _round_up(B, tb)

    # Host-side pad + bf16 cast of the activations (half the input DMA bytes,
    # no in-kernel f32->bf16 cast of the x tile).
    x = jnp.pad(features, ((0, b_pad - B), (0, d_pad - D))).astype(jnp.bfloat16)

    x_spec = pl.BlockSpec((tb, d_pad), lambda i: (i, 0))
    weight_specs = [pl.BlockSpec(a.shape, lambda i: (0, 0)) for a in flat]
    out_spec = pl.BlockSpec((tb, out_pad), lambda i: (i, 0))

    flops = 2 * b_pad * sum(int(flat[k].shape[0]) * int(flat[k].shape[1])
                            for k in range(0, len(flat), 2))
    bytes_accessed = (b_pad * d_pad * 2           # bf16 input
                      + b_pad * out_pad * 2       # bf16 output
                      + sum(int(a.size) * a.dtype.itemsize for a in flat))

    logits_pad = pl.pallas_call(
        functools.partial(_classifier_kernel, bf16_epilogue=bf16_epilogue),
        out_shape=jax.ShapeDtypeStruct((b_pad, out_pad), jnp.bfloat16),
        grid=(b_pad // tb,),
        in_specs=[x_spec] + weight_specs,
        out_specs=out_spec,
        compiler_params=pltpu.CompilerParams(
            dimension_semantics=("parallel",)),
        cost_estimate=pl.CostEstimate(flops=flops, transcendentals=0,
                                      bytes_accessed=bytes_accessed),
    )(x, *flat)

    return logits_pad[:B, :num_classes].astype(jnp.float32)


# --------------------------------------------------------------------------
# References.
# --------------------------------------------------------------------------
def reference_forward(features, params):
    """Pure-JAX f32 reference (eval: BN uses running stats, dropout = id)."""
    h = features
    for li in range(len(HIDDEN)):
        h = jnp.maximum(h @ params[li]["w"] + params[li]["b"], 0.0)
        scale, shift = fold_bn(params[li])
        h = h * scale + shift
    return h @ params[-1]["w"] + params[-1]["b"]


def reference_forward_bf16(features, flat, num_classes=NUM_CLASSES,
                           bf16_epilogue=True):
    """Pure-JAX reference matching the kernel's bf16 MXU/epilogue path."""
    hid_dtype = jnp.bfloat16 if bf16_epilogue else jnp.float32
    B, D = features.shape
    h = jnp.pad(features, ((0, 0), (0, _round_up(D, LANE) - D))).astype(jnp.bfloat16)
    for k in range(0, len(flat) - 2, 2):
        w, b = flat[k], flat[k + 1]
        z = jnp.dot(h, w, preferred_element_type=jnp.float32)
        z = z.astype(hid_dtype) + b.astype(hid_dtype)
        h = jnp.maximum(z, 0).astype(jnp.bfloat16)
    z = jnp.dot(h, flat[-2], preferred_element_type=jnp.float32) + flat[-1]
    return z.astype(jnp.bfloat16).astype(jnp.float32)[:, :num_classes]


if __name__ == "__main__":
    key = jax.random.PRNGKey(0)
    key_params, key_x = jax.random.split(key)

    params = init_params(key_params)
    # Prepare once (BN fold + pad + bf16 cast) outside the jitted forward.
    flat = prepare_kernel_params(params)

    # Synthetic "radio_features" (output of the frozen pretrained video encoder).
    batch = 8
    features = jax.random.normal(key_x, (batch, INPUT_DIM), jnp.float32)

    logits = linear_classifier_forward(features, flat)
    jax.block_until_ready(logits)
    assert logits.shape == (batch, NUM_CLASSES)

    # Tight check vs a reference using the same bf16 math.
    ref_bf16 = reference_forward_bf16(features, flat)
    assert jnp.allclose(logits, ref_bf16, atol=2.5e-2, rtol=2.5e-2), \
        "mismatch vs bf16-matched reference"
    # Sanity check vs the full-f32 reference (bf16 path => loose tolerance).
    ref_f32 = reference_forward(features, params)
    assert jnp.allclose(logits, ref_f32, atol=2e-1, rtol=2e-1), \
        "mismatch vs f32 reference"

    print("KERNEL_OK")
</pallas_src>

<mosaic_0001>
module attributes {stable_mosaic.version = 11 : i64} {
  func.func @_classifier_kernel(%arg0: i32, %arg1: memref<8x128xbf16, #tpu.memory_space<vmem>>, %arg2: memref<128x512xbf16, #tpu.memory_space<vmem>>, %arg3: memref<1x512xf32, #tpu.memory_space<vmem>>, %arg4: memref<512x256xbf16, #tpu.memory_space<vmem>>, %arg5: memref<1x256xf32, #tpu.memory_space<vmem>>, %arg6: memref<256x128xbf16, #tpu.memory_space<vmem>>, %arg7: memref<1x128xf32, #tpu.memory_space<vmem>>, %arg8: memref<128x128xbf16, #tpu.memory_space<vmem>>, %arg9: memref<1x128xf32, #tpu.memory_space<vmem>>, %arg10: memref<128x128xbf16, #tpu.memory_space<vmem>>, %arg11: memref<1x128xf32, #tpu.memory_space<vmem>>, %arg12: memref<128x128xbf16, #tpu.memory_space<vmem>>, %arg13: memref<1x128xf32, #tpu.memory_space<vmem>>, %arg14: memref<8x128xbf16, #tpu.memory_space<vmem>>) attributes {dimension_semantics = [#tpu.dimension_semantics<parallel>], iteration_bounds = array<i64: 1>, scalar_prefetch = 0 : i64, scratch_operands = 0 : i64, tpu.core_type = #tpu.core_type<tc>, window_params = [{transform_indices = @transform_0, window_bounds = array<i64: 8, 128>}, {pipeline_mode = #tpu.pipeline_mode<synchronous>, transform_indices = @transform_1, window_bounds = array<i64: 128, 512>}, {pipeline_mode = #tpu.pipeline_mode<synchronous>, transform_indices = @transform_2, window_bounds = array<i64: 1, 512>}, {pipeline_mode = #tpu.pipeline_mode<synchronous>, transform_indices = @transform_3, window_bounds = array<i64: 512, 256>}, {pipeline_mode = #tpu.pipeline_mode<synchronous>, transform_indices = @transform_4, window_bounds = array<i64: 1, 256>}, {pipeline_mode = #tpu.pipeline_mode<synchronous>, transform_indices = @transform_5, window_bounds = array<i64: 256, 128>}, {pipeline_mode = #tpu.pipeline_mode<synchronous>, transform_indices = @transform_6, window_bounds = array<i64: 1, 128>}, {pipeline_mode = #tpu.pipeline_mode<synchronous>, transform_indices = @transform_7, window_bounds = array<i64: 128, 128>}, {pipeline_mode = #tpu.pipeline_mode<synchronous>, transform_indices = @transform_8, window_bounds = array<i64: 1, 128>}, {pipeline_mode = #tpu.pipeline_mode<synchronous>, transform_indices = @transform_9, window_bounds = array<i64: 128, 128>}, {pipeline_mode = #tpu.pipeline_mode<synchronous>, transform_indices = @transform_10, window_bounds = array<i64: 1, 128>}, {pipeline_mode = #tpu.pipeline_mode<synchronous>, transform_indices = @transform_11, window_bounds = array<i64: 128, 128>}, {pipeline_mode = #tpu.pipeline_mode<synchronous>, transform_indices = @transform_12, window_bounds = array<i64: 1, 128>}, {transform_indices = @transform_13, window_bounds = array<i64: 8, 128>}]} {
    %c0 = arith.constant 0 : index
    %c0_0 = arith.constant 0 : index
    %0 = vector.load %arg1[%c0, %c0_0] : memref<8x128xbf16, #tpu.memory_space<vmem>>, vector<8x128xbf16>
    %c0_1 = arith.constant 0 : index
    %c0_2 = arith.constant 0 : index
    %1 = vector.load %arg2[%c0_1, %c0_2] : memref<128x512xbf16, #tpu.memory_space<vmem>>, vector<128x512xbf16>
    %cst = arith.constant dense<0.000000e+00> : vector<8x512xf32>
    %2 = tpu.matmul %0, %1, %cst {dimension_numbers = #tpu.dot_dimension_numbers<[1], [0], [0], [1], [0, 0, 1, 1], [], []>} : vector<8x128xbf16>, vector<128x512xbf16>, vector<8x512xf32> -> vector<8x512xf32>
    %3 = arith.truncf %2 : vector<8x512xf32> to vector<8x512xbf16>
    %c0_3 = arith.constant 0 : index
    %c0_4 = arith.constant 0 : index
    %4 = vector.load %arg3[%c0_3, %c0_4] : memref<1x512xf32, #tpu.memory_space<vmem>>, vector<1x512xf32>
    %5 = arith.truncf %4 : vector<1x512xf32> to vector<1x512xbf16>
    %6 = vector.broadcast %5 : vector<1x512xbf16> to vector<8x512xbf16>
    %7 = arith.addf %3, %6 : vector<8x512xbf16>
    %cst_5 = arith.constant 0.000000e+00 : bf16
    %8 = vector.broadcast %cst_5 : bf16 to vector<8x512xbf16>
    %9 = arith.maximumf %7, %8 : vector<8x512xbf16>
    %c0_6 = arith.constant 0 : index
    %c0_7 = arith.constant 0 : index
    %10 = vector.load %arg4[%c0_6, %c0_7] : memref<512x256xbf16, #tpu.memory_space<vmem>>, vector<512x256xbf16>
    %cst_8 = arith.constant dense<0.000000e+00> : vector<8x256xf32>
    %11 = tpu.matmul %9, %10, %cst_8 {dimension_numbers = #tpu.dot_dimension_numbers<[1], [0], [0], [1], [0, 0, 1, 1], [], []>} : vector<8x512xbf16>, vector<512x256xbf16>, vector<8x256xf32> -> vector<8x256xf32>
    %12 = arith.truncf %11 : vector<8x256xf32> to vector<8x256xbf16>
    %c0_9 = arith.constant 0 : index
    %c0_10 = arith.constant 0 : index
    %13 = vector.load %arg5[%c0_9, %c0_10] : memref<1x256xf32, #tpu.memory_space<vmem>>, vector<1x256xf32>
    %14 = arith.truncf %13 : vector<1x256xf32> to vector<1x256xbf16>
    %15 = vector.broadcast %14 : vector<1x256xbf16> to vector<8x256xbf16>
    %16 = arith.addf %12, %15 : vector<8x256xbf16>
    %cst_11 = arith.constant 0.000000e+00 : bf16
    %17 = vector.broadcast %cst_11 : bf16 to vector<8x256xbf16>
    %18 = arith.maximumf %16, %17 : vector<8x256xbf16>
    %c0_12 = arith.constant 0 : index
    %c0_13 = arith.constant 0 : index
    %19 = vector.load %arg6[%c0_12, %c0_13] : memref<256x128xbf16, #tpu.memory_space<vmem>>, vector<256x128xbf16>
    %cst_14 = arith.constant dense<0.000000e+00> : vector<8x128xf32>
    %20 = tpu.matmul %18, %19, %cst_14 {dimension_numbers = #tpu.dot_dimension_numbers<[1], [0], [0], [1], [0, 0, 1, 1], [], []>} : vector<8x256xbf16>, vector<256x128xbf16>, vector<8x128xf32> -> vector<8x128xf32>
    %21 = arith.truncf %20 : vector<8x128xf32> to vector<8x128xbf16>
    %c0_15 = arith.constant 0 : index
    %c0_16 = arith.constant 0 : index
    %22 = vector.load %arg7[%c0_15, %c0_16] : memref<1x128xf32, #tpu.memory_space<vmem>>, vector<1x128xf32>
    %23 = arith.truncf %22 : vector<1x128xf32> to vector<1x128xbf16>
    %24 = vector.broadcast %23 : vector<1x128xbf16> to vector<8x128xbf16>
    %25 = arith.addf %21, %24 : vector<8x128xbf16>
    %cst_17 = arith.constant 0.000000e+00 : bf16
    %26 = vector.broadcast %cst_17 : bf16 to vector<8x128xbf16>
    %27 = arith.maximumf %25, %26 : vector<8x128xbf16>
    %c0_18 = arith.constant 0 : index
    %c0_19 = arith.constant 0 : index
    %28 = vector.load %arg8[%c0_18, %c0_19] : memref<128x128xbf16, #tpu.memory_space<vmem>>, vector<128x128xbf16>
    %cst_20 = arith.constant dense<0.000000e+00> : vector<8x128xf32>
    %29 = tpu.matmul %27, %28, %cst_20 {dimension_numbers = #tpu.dot_dimension_numbers<[1], [0], [0], [1], [0, 0, 1, 1], [], []>} : vector<8x128xbf16>, vector<128x128xbf16>, vector<8x128xf32> -> vector<8x128xf32>
    %30 = arith.truncf %29 : vector<8x128xf32> to vector<8x128xbf16>
    %c0_21 = arith.constant 0 : index
    %c0_22 = arith.constant 0 : index
    %31 = vector.load %arg9[%c0_21, %c0_22] : memref<1x128xf32, #tpu.memory_space<vmem>>, vector<1x128xf32>
    %32 = arith.truncf %31 : vector<1x128xf32> to vector<1x128xbf16>
    %33 = vector.broadcast %32 : vector<1x128xbf16> to vector<8x128xbf16>
    %34 = arith.addf %30, %33 : vector<8x128xbf16>
    %cst_23 = arith.constant 0.000000e+00 : bf16
    %35 = vector.broadcast %cst_23 : bf16 to vector<8x128xbf16>
    %36 = arith.maximumf %34, %35 : vector<8x128xbf16>
    %c0_24 = arith.constant 0 : index
    %c0_25 = arith.constant 0 : index
    %37 = vector.load %arg10[%c0_24, %c0_25] : memref<128x128xbf16, #tpu.memory_space<vmem>>, vector<128x128xbf16>
    %cst_26 = arith.constant dense<0.000000e+00> : vector<8x128xf32>
    %38 = tpu.matmul %36, %37, %cst_26 {dimension_numbers = #tpu.dot_dimension_numbers<[1], [0], [0], [1], [0, 0, 1, 1], [], []>} : vector<8x128xbf16>, vector<128x128xbf16>, vector<8x128xf32> -> vector<8x128xf32>
    %39 = arith.truncf %38 : vector<8x128xf32> to vector<8x128xbf16>
    %c0_27 = arith.constant 0 : index
    %c0_28 = arith.constant 0 : index
    %40 = vector.load %arg11[%c0_27, %c0_28] : memref<1x128xf32, #tpu.memory_space<vmem>>, vector<1x128xf32>
    %41 = arith.truncf %40 : vector<1x128xf32> to vector<1x128xbf16>
    %42 = vector.broadcast %41 : vector<1x128xbf16> to vector<8x128xbf16>
    %43 = arith.addf %39, %42 : vector<8x128xbf16>
    %cst_29 = arith.constant 0.000000e+00 : bf16
    %44 = vector.broadcast %cst_29 : bf16 to vector<8x128xbf16>
    %45 = arith.maximumf %43, %44 : vector<8x128xbf16>
    %c0_30 = arith.constant 0 : index
    %c0_31 = arith.constant 0 : index
    %46 = vector.load %arg12[%c0_30, %c0_31] : memref<128x128xbf16, #tpu.memory_space<vmem>>, vector<128x128xbf16>
    %cst_32 = arith.constant dense<0.000000e+00> : vector<8x128xf32>
    %47 = tpu.matmul %45, %46, %cst_32 {dimension_numbers = #tpu.dot_dimension_numbers<[1], [0], [0], [1], [0, 0, 1, 1], [], []>} : vector<8x128xbf16>, vector<128x128xbf16>, vector<8x128xf32> -> vector<8x128xf32>
    %c0_33 = arith.constant 0 : index
    %c0_34 = arith.constant 0 : index
    %48 = vector.load %arg13[%c0_33, %c0_34] : memref<1x128xf32, #tpu.memory_space<vmem>>, vector<1x128xf32>
    %49 = vector.broadcast %48 : vector<1x128xf32> to vector<8x128xf32>
    %50 = arith.addf %47, %49 : vector<8x128xf32>
    %51 = arith.truncf %50 : vector<8x128xf32> to vector<8x128xbf16>
    %c0_35 = arith.constant 0 : index
    %c0_36 = arith.constant 0 : index
    %52 = vector.load %arg14[%c0_35, %c0_36] : memref<8x128xbf16, #tpu.memory_space<vmem>>, vector<8x128xbf16>
    tpu.vector_store %arg14[%c0_35, %c0_36], %51 {strides = array<i32>} : memref<8x128xbf16, #tpu.memory_space<vmem>>, vector<8x128xbf16>,
    return
  }
  func.func @transform_0(%arg0: i32) -> (i32, i32) {
    %c0_i32 = arith.constant 0 : i32
    %c0_i32_0 = arith.constant 0 : i32
    return %arg0, %c0_i32 : i32, i32
  }
  func.func @transform_1(%arg0: i32) -> (i32, i32) {
    %c0_i32 = arith.constant 0 : i32
    %c0_i32_0 = arith.constant 0 : i32
    %c0_i32_1 = arith.constant 0 : i32
    return %c0_i32, %c0_i32_0 : i32, i32
  }
  func.func @transform_2(%arg0: i32) -> (i32, i32) {
    %c0_i32 = arith.constant 0 : i32
    %c0_i32_0 = arith.constant 0 : i32
    %c0_i32_1 = arith.constant 0 : i32
    return %c0_i32, %c0_i32_0 : i32, i32
  }
  func.func @transform_3(%arg0: i32) -> (i32, i32) {
    %c0_i32 = arith.constant 0 : i32
    %c0_i32_0 = arith.constant 0 : i32
    %c0_i32_1 = arith.constant 0 : i32
    return %c0_i32, %c0_i32_0 : i32, i32
  }
  func.func @transform_4(%arg0: i32) -> (i32, i32) {
    %c0_i32 = arith.constant 0 : i32
    %c0_i32_0 = arith.constant 0 : i32
    %c0_i32_1 = arith.constant 0 : i32
    return %c0_i32, %c0_i32_0 : i32, i32
  }
  func.func @transform_5(%arg0: i32) -> (i32, i32) {
    %c0_i32 = arith.constant 0 : i32
    %c0_i32_0 = arith.constant 0 : i32
    %c0_i32_1 = arith.constant 0 : i32
    return %c0_i32, %c0_i32_0 : i32, i32
  }
  func.func @transform_6(%arg0: i32) -> (i32, i32) {
    %c0_i32 = arith.constant 0 : i32
    %c0_i32_0 = arith.constant 0 : i32
    %c0_i32_1 = arith.constant 0 : i32
    return %c0_i32, %c0_i32_0 : i32, i32
  }
  func.func @transform_7(%arg0: i32) -> (i32, i32) {
    %c0_i32 = arith.constant 0 : i32
    %c0_i32_0 = arith.constant 0 : i32
    %c0_i32_1 = arith.constant 0 : i32
    return %c0_i32, %c0_i32_0 : i32, i32
  }
  func.func @transform_8(%arg0: i32) -> (i32, i32) {
    %c0_i32 = arith.constant 0 : i32
    %c0_i32_0 = arith.constant 0 : i32
    %c0_i32_1 = arith.constant 0 : i32
    return %c0_i32, %c0_i32_0 : i32, i32
  }
  func.func @transform_9(%arg0: i32) -> (i32, i32) {
    %c0_i32 = arith.constant 0 : i32
    %c0_i32_0 = arith.constant 0 : i32
    %c0_i32_1 = arith.constant 0 : i32
    return %c0_i32, %c0_i32_0 : i32, i32
  }
  func.func @transform_10(%arg0: i32) -> (i32, i32) {
    %c0_i32 = arith.constant 0 : i32
    %c0_i32_0 = arith.constant 0 : i32
    %c0_i32_1 = arith.constant 0 : i32
    return %c0_i32, %c0_i32_0 : i32, i32
  }
  func.func @transform_11(%arg0: i32) -> (i32, i32) {
    %c0_i32 = arith.constant 0 : i32
    %c0_i32_0 = arith.constant 0 : i32
    %c0_i32_1 = arith.constant 0 : i32
    return %c0_i32, %c0_i32_0 : i32, i32
  }
  func.func @transform_12(%arg0: i32) -> (i32, i32) {
    %c0_i32 = arith.constant 0 : i32
    %c0_i32_0 = arith.constant 0 : i32
    %c0_i32_1 = arith.constant 0 : i32
    return %c0_i32, %c0_i32_0 : i32, i32
  }
  func.func @transform_13(%arg0: i32) -> (i32, i32) {
    %c0_i32 = arith.constant 0 : i32
    %c0_i32_0 = arith.constant 0 : i32
    return %arg0, %c0_i32 : i32, i32
  }
}

</mosaic_0001>

<bundles_post_ra>
// kernel: linear_classifier_forward.1
= control target key start
LH: loop header
LB: loop body
LE: loop exit
PB: predicated region body
PF: predicated region fallthrough
CT: control target
= control target key end

     0   :  { %18 = vsyncpa [#allocation3], 0  ;;  %s2347_s0 = inlined_call_operand.vmem [shape: bf16[8,128], index: 0, kind: input, shape index: {}]   ;;  %s2348_s1 = inlined_call_operand.hbm [shape: bf16[128,512], index: 1, kind: input, shape index: {}]   ;;  %s2349_s2 = inlined_call_operand.vmem [shape: f32[1,512], index: 2, kind: input, shape index: {}]   ;;  %s2350_s3 = inlined_call_operand.hbm [shape: bf16[512,256], index: 3, kind: input, shape index: {}]   ;;  %s2351_s4 = inlined_call_operand.vmem [shape: f32[1,256], index: 4, kind: input, shape index: {}]   ;;  %s2352_s5 = inlined_call_operand.hbm [shape: bf16[256,128], index: 5, kind: input, shape index: {}]   ;;  %s2353_s6 = inlined_call_operand.vmem [shape: f32[1,128], index: 6, kind: input, shape index: {}]   ;;  %s2354_s7 = inlined_call_operand.hbm [shape: bf16[128,128], index: 7, kind: input, shape index: {}]   ;;  %s2355_s8 = inlined_call_operand.vmem [shape: f32[1,128], index: 8, kind: input, shape index: {}]   ;;  %s2356_s9 = inlined_call_operand.hbm [shape: bf16[128,128], index: 9, kind: input, shape index: {}]   ;;  %s2357_s10 = inlined_call_operand.vmem [shape: f32[1,128], index: 10, kind: input, shape index: {}]   ;;  %s2358_s11 = inlined_call_operand.hbm [shape: bf16[128,128], index: 11, kind: input, shape index: {}]   ;;  %s2359_s12 = inlined_call_operand.vmem [shape: f32[1,128], index: 12, kind: input, shape index: {}]   ;;  %s2360_s13 = inlined_call_operand.vmem [shape: bf16[8,128], index: 13, kind: output, shape index: {}]  }
   0x1   :  { %19 = vsyncpa [#allocation5], 0 }
   0x2   :  { %20 = vsyncpa [#allocation8], 0 }
   0x3   :  { %21 = vsyncpa [#allocation11], 0  ;;  %s2090_s25 = smov [#allocation4]   ;;  %s1950_s29 = scalar_lea.hbm %s2350_s3, 8192 }
   0x4   :  { %s43_s26 = sshll.u32 %s2090_s25, 4  ;;  %p1951_p0 = scmp.ne.s32.totalorder %s2350_s3, %s1950_s29  ;;  %s44_s26 = int_to_ptr.vmem [resolvable:$true] %s43_s26 }
   0x5   :  { %p1954_p1 = scmp.lt.u32.totalorder %s1950_s29, %s2350_s3 }
   0x7   :  { %p1956_p2 = pnand %p1954_p1, %p1951_p0 }
   0x9   :  { %1959 = shalt.err (!%p1956_p2)
}
   0xa   :  { %s1960_s17 = scalar_lea.vmem %s44_s26, 8192  ;;  %p1965_p4 = scmp.lt.s32.totalorder %s44_s26, %s44_s26 }
   0xb   :  { %p1961_p3 = scmp.ne.s32.totalorder %s44_s26, %s1960_s17  ;;  %p1966_p5 = scmp.lt.s32.totalorder %s1960_s17, %s1960_s17 }
   0xd   :  { %p1967_p6 = por %p1966_p5, %p1965_p4 }
   0xf   :  { %p1968_p7 = pnand %p1967_p6, %p1961_p3 }
  0x11   :  { %1971 = shalt.err (!%p1968_p7)
}
  0x12   :  { %s2091_s18 = smov 128   ;;  %s2092_s19 = smov 8  }
  0x13   :  { %49 = dma.hbm_to_vmem [thread:$0]  %s2350_s3, 8192, %s44_s26, [#allocation5], %s2091_s18, %s2091_s18, %s2092_s19  }
  0x14   :  { %s2093_s22 = smov [#allocation7]   ;;  %s2094_s24 = smov [#allocation2]  }
  0x15   :  { %s71_s23 = sshll.u32 %s2093_s22, 4  ;;  %s29_s25 = sshll.u32 %s2094_s24, 4  ;;  %s72_s23 = int_to_ptr.vmem [resolvable:$true] %s71_s23  ;;  %s30_s25 = int_to_ptr.vmem [resolvable:$true] %s29_s25 }
  0x16   :  { %s1972_s29 = scalar_lea.hbm %s2354_s7, 1024 }
  0x17   :  { %p1973_p8 = scmp.ne.s32.totalorder %s2354_s7, %s1972_s29  ;;  %p1976_p9 = scmp.lt.u32.totalorder %s1972_s29, %s2354_s7 }
  0x19   :  { %p1978_p10 = pnand %p1976_p9, %p1973_p8 }
  0x1b   :  { %1981 = shalt.err (!%p1978_p10)
}
  0x1c   :  { %s1982_s3 = scalar_lea.vmem %s72_s23, 1024  ;;  %p1987_p12 = scmp.lt.s32.totalorder %s72_s23, %s72_s23 }
  0x1d   :  { %p1983_p11 = scmp.ne.s32.totalorder %s72_s23, %s1982_s3  ;;  %p1988_p13 = scmp.lt.s32.totalorder %s1982_s3, %s1982_s3 }
  0x1f   :  { %p1989_p0 = por %p1988_p13, %p1987_p12 }
  0x21   :  { %p1990_p1 = pnand %p1989_p0, %p1983_p11 }
  0x23   :  { %1993 = shalt.err (!%p1990_p1)
}
  0x24   :  { %s2095_s26 = smov 64   ;;  %s2096_s17 = smov 4  }
  0x25   :  { %77 = dma.hbm_to_vmem [thread:$0]  %s2354_s7, 1024, %s72_s23, [#allocation8], %s2095_s26, %s2095_s26, %s2096_s17  }
  0x26   :  { %s1994_s22 = scalar_lea.hbm %s2348_s1, 4096 }
  0x27   :  { %p1995_p2 = scmp.ne.s32.totalorder %s2348_s1, %s1994_s22  ;;  %p1998_p3 = scmp.lt.u32.totalorder %s1994_s22, %s2348_s1 }
  0x29   :  { %p2000_p4 = pnand %p1998_p3, %p1995_p2 }
  0x2b   :  { %2003 = shalt.err (!%p2000_p4)
}
  0x2c   :  { %s2004_s30 = scalar_lea.vmem %s30_s25, 4096  ;;  %p2009_p6 = scmp.lt.s32.totalorder %s30_s25, %s30_s25 }
  0x2d   :  { %p2005_p5 = scmp.ne.s32.totalorder %s30_s25, %s2004_s30  ;;  %p2010_p7 = scmp.lt.s32.totalorder %s2004_s30, %s2004_s30 }
  0x2f   :  { %p2011_p8 = por %p2010_p7, %p2009_p6 }
  0x31   :  { %p2012_p9 = pnand %p2011_p8, %p2005_p5 }
  0x33   :  { %2015 = shalt.err (!%p2012_p9)
}
  0x34   :  { %s2097_s7 = smov 256   ;;  %s2098_s23 = smov 16  }
  0x35   :  { %35 = dma.hbm_to_vmem [thread:$0]  %s2348_s1, 4096, %s30_s25, [#allocation3], %s2097_s7, %s2097_s7, %s2098_s23  }
  0x36   :  { %s2099_s16 = smov [#allocation6]   ;;  %s2100_s18 = smov [#allocation9]  }
  0x37   :  { %s57_s3 = sshll.u32 %s2099_s16, 4  ;;  %s85_s19 = sshll.u32 %s2100_s18, 4  ;;  %s58_s3 = int_to_ptr.vmem [resolvable:$true] %s57_s3  ;;  %s86_s19 = int_to_ptr.vmem [resolvable:$true] %s85_s19 }
  0x38   :  { %s2016_s22 = scalar_lea.hbm %s2352_s5, 2048 }
  0x39   :  { %p2017_p10 = scmp.ne.s32.totalorder %s2352_s5, %s2016_s22  ;;  %p2020_p11 = scmp.lt.u32.totalorder %s2016_s22, %s2352_s5 }
  0x3b   :  { %p2022_p12 = pnand %p2020_p11, %p2017_p10 }
  0x3d   :  { %2025 = shalt.err (!%p2022_p12)
}
  0x3e   :  { %s2026_s1 = scalar_lea.vmem %s58_s3, 2048  ;;  %p2031_p0 = scmp.lt.s32.totalorder %s58_s3, %s58_s3 }
  0x3f   :  { %p2027_p13 = scmp.ne.s32.totalorder %s58_s3, %s2026_s1  ;;  %p2032_p1 = scmp.lt.s32.totalorder %s2026_s1, %s2026_s1 }
  0x41   :  { %p2033_p2 = por %p2032_p1, %p2031_p0 }
  0x43   :  { %p2034_p3 = pnand %p2033_p2, %p2027_p13 }
  0x45   :  { %2037 = shalt.err (!%p2034_p3)
}
  0x46   :  { %63 = dma.hbm_to_vmem [thread:$0]  %s2352_s5, 2048, %s58_s3, [#allocation5], %s2095_s26, %s2095_s26, %s2096_s17  }
  0x47   :  { %s2038_s14 = scalar_lea.hbm %s2356_s9, 1024 }
  0x48   :  { %p2039_p4 = scmp.ne.s32.totalorder %s2356_s9, %s2038_s14  ;;  %p2042_p5 = scmp.lt.u32.totalorder %s2038_s14, %s2356_s9 }
  0x4a   :  { %p2044_p6 = pnand %p2042_p5, %p2039_p4 }
  0x4c   :  { %2047 = shalt.err (!%p2044_p6)
}
  0x4d   :  { %s2048_s21 = scalar_lea.vmem %s86_s19, 1024  ;;  %p2053_p8 = scmp.lt.s32.totalorder %s86_s19, %s86_s19 }
  0x4e   :  { %p2049_p7 = scmp.ne.s32.totalorder %s86_s19, %s2048_s21  ;;  %p2054_p9 = scmp.lt.s32.totalorder %s2048_s21, %s2048_s21 }
  0x50   :  { %p2055_p10 = por %p2054_p9, %p2053_p8 }
  0x52   :  { %p2056_p11 = pnand %p2055_p10, %p2049_p7 }
  0x54   :  { %2059 = shalt.err (!%p2056_p11)
}
  0x55   :  { %91 = dma.hbm_to_vmem [thread:$0]  %s2356_s9, 1024, %s86_s19, [#allocation8], %s2095_s26, %s2095_s26, %s2096_s17  }
  0x56   :  { %s2101_s22 = smov [#allocation10]   ;;  %s2060_s29 = scalar_lea.hbm %s2358_s11, 1024 }
  0x57   :  { %s99_s24 = sshll.u32 %s2101_s22, 4  ;;  %p2061_p12 = scmp.ne.s32.totalorder %s2358_s11, %s2060_s29  ;;  %s100_s24 = int_to_ptr.vmem [resolvable:$true] %s99_s24 }
  0x58   :  { %p2064_p13 = scmp.lt.u32.totalorder %s2060_s29, %s2358_s11 }
  0x5a   :  { %p2066_p0 = pnand %p2064_p13, %p2061_p12 }
  0x5c   :  { %2069 = shalt.err (!%p2066_p0)
}
  0x5d   :  { %s2070_s23 = scalar_lea.vmem %s100_s24, 1024  ;;  %p2075_p2 = scmp.lt.s32.totalorder %s100_s24, %s100_s24 }
  0x5e   :  { %p2071_p1 = scmp.ne.s32.totalorder %s100_s24, %s2070_s23  ;;  %p2076_p3 = scmp.lt.s32.totalorder %s2070_s23, %s2070_s23 }
  0x60   :  { %p2077_p4 = por %p2076_p3, %p2075_p2 }
  0x62   :  { %p2078_p5 = pnand %p2077_p4, %p2071_p1 }
  0x64   :  { %2081 = shalt.err (!%p2078_p5)
}
  0x65   :  { %105 = dma.hbm_to_vmem [thread:$0]  %s2358_s11, 1024, %s100_s24, [#allocation11], %s2095_s26, %s2095_s26, %s2096_s17  }
  0x66   :  { %2082 = dma.done.wait [#allocation3], 4096  }
  0x67   :  { %2083 = vsyncadd [#allocation3], 4294963200 }
  0x68   :  { %2084 = dma.done.wait [#allocation5], 10240  }
  0x69   :  { %2085 = vsyncadd [#allocation5], 4294957056 }
  0x6a   :  { %2086 = dma.done.wait [#allocation8], 2048  }
  0x6b   :  { %2087 = vsyncadd [#allocation8], 4294965248 }
  0x6c   :  { %2088 = dma.done.wait [#allocation11], 1024  }
  0x6d   :  { %2089 = vsyncadd [#allocation11], 4294966272  ;;  %v2102_v0 = vmov 0   ;;  %v1766_v1 = vld [vmem:[#allocation2 + $0x4] ss:$16 sps:$4 sm:$0xff]   ;;  %vm2104_vm0 = vmmov 0  }
  0x6e   :  { %352 = vmatprep.mubr.bf16.mxu0 %v2102_v0  ;;  %393 = vmatprep.mubr.bf16.mxu1 %v2102_v0  ;;  %v1768_v2 = vld [vmem:[#allocation2] ss:$16 sps:$4 sm:$0xff]   ;;  %v1769_v3 = vld [vmem:[#allocation2 + $0x24] ss:$16 sps:$4 sm:$0xff]   ;;  %v1790_v10 = vld [vmem:[#allocation2 + $0xc] ss:$16 sps:$4 sm:$0xff]  }
  0x6f   :  { %320 = vmatprep.subr.bf16.mxu0 %v1766_v1  ;;  %v1771_v4 = vld [vmem:[#allocation2 + $0x20] ss:$16 sps:$4 sm:$0xff]   ;;  %v1772_v5 = vld [vmem:[#allocation2 + $0x44] ss:$16 sps:$4 sm:$0xff]   ;;  %v1792_v11 = vld [vmem:[#allocation2 + $0x8] ss:$16 sps:$4 sm:$0xff]   ;;  %361 = vmatprep.subr.bf16.mxu1 %v1790_v10 }
  0x70   :  { %321 = vmatpush1.bf16.msra.mxu0 %v1768_v2  ;;  %v1774_v6 = vld [vmem:[#allocation2 + $0x40] ss:$16 sps:$4 sm:$0xff]   ;;  %v1775_v7 = vld [vmem:[#allocation2 + $0x64] ss:$16 sps:$4 sm:$0xff]   ;;  %v1793_v12 = vld [vmem:[#allocation2 + $0x2c] ss:$16 sps:$4 sm:$0xff]   ;;  %362 = vmatpush1.bf16.msra.mxu1 %v1792_v11 }
  0x71   :  { %322 = vmatprep.subr.bf16.mxu0 %v1769_v3  ;;  %v1777_v8 = vld [vmem:[#allocation2 + $0x60] ss:$16 sps:$4 sm:$0xff]   ;;  %v1778_v9 = vld [vmem:[#allocation2 + $0x84] ss:$16 sps:$4 sm:$0xff]   ;;  %v1795_v14 = vld [vmem:[#allocation2 + $0x28] ss:$16 sps:$4 sm:$0xff]   ;;  %363 = vmatprep.subr.bf16.mxu1 %v1793_v12 }
  0x72   :  { %v1780_v13 = vld [vmem:[#allocation2 + $0x80] ss:$16 sps:$4 sm:$0xff]   ;;  %v1796_v15 = vld [vmem:[#allocation2 + $0x4c] ss:$16 sps:$4 sm:$0xff]   ;;  %v1781_v16 = vld [vmem:[#allocation2 + $0xa4] ss:$16 sps:$4 sm:$0xff]  }
  0x73   :  { %v1783_v17 = vld [vmem:[#allocation2 + $0xa0] ss:$16 sps:$4 sm:$0xff]   ;;  %v1798_v18 = vld [vmem:[#allocation2 + $0x48] ss:$16 sps:$4 sm:$0xff]   ;;  %v1799_v19 = vld [vmem:[#allocation2 + $0x6c] ss:$16 sps:$4 sm:$0xff]  }
  0x74   :  { %323 = vmatpush1.bf16.msra.mxu0 %v1771_v4  ;;  %364 = vmatpush1.bf16.msra.mxu1 %v1795_v14  ;;  %v1784_v20 = vld [vmem:[#allocation2 + $0xc4] ss:$16 sps:$4 sm:$0xff]   ;;  %v1786_v21 = vld [vmem:[#allocation2 + $0xc0] ss:$16 sps:$4 sm:$0xff]   ;;  %v1801_v22 = vld [vmem:[#allocation2 + $0x68] ss:$16 sps:$4 sm:$0xff]   ;;  %v408_v4 = vlaneseq }
  0x75   :  { %324 = vmatprep.subr.bf16.mxu0 %v1772_v5  ;;  %365 = vmatprep.subr.bf16.mxu1 %v1796_v15  ;;  %v1802_v23 = vld [vmem:[#allocation2 + $0x8c] ss:$16 sps:$4 sm:$0xff]   ;;  %v1787_v24 = vld [vmem:[#allocation2 + $0xe4] ss:$16 sps:$4 sm:$0xff]   ;;  %v1789_v25 = vld [vmem:[#allocation2 + $0xe0] ss:$16 sps:$4 sm:$0xff]  }
  0x76   :  { %v1804_v26 = vld [vmem:[#allocation2 + $0x88] ss:$16 sps:$4 sm:$0xff]   ;;  %v1805_v27 = vld [vmem:[#allocation2 + $0xac] ss:$16 sps:$4 sm:$0xff]   ;;  %v127_v29 = vld [vmem:[%s2347_s0] sm:$0xf] }
  0x77   :  { %v1816_v28 = vld [vmem:[#allocation4 + $0x4] ss:$8 sps:$4 sm:$0xff]   ;;  %v1807_v30 = vld [vmem:[#allocation2 + $0xa8] ss:$16 sps:$4 sm:$0xff]   ;;  %v1819_v33 = vld [vmem:[#allocation4 + $0x14] ss:$8 sps:$4 sm:$0xff]  }
  0x78   :  { %325 = vmatpush1.bf16.msra.mxu0 %v1774_v6  ;;  %366 = vmatpush1.bf16.msra.mxu1 %v1798_v18  ;;  %v1808_v31 = vld [vmem:[#allocation2 + $0xcc] ss:$16 sps:$4 sm:$0xff]   ;;  %v1814_v32 = vld [vmem:[#allocation4] ss:$8 sps:$4 sm:$0xff]   ;;  %v1817_v36 = vld [vmem:[#allocation4 + $0x10] ss:$8 sps:$4 sm:$0xff]  }
  0x79   :  { %326 = vmatprep.subr.bf16.mxu0 %v1775_v7  ;;  %367 = vmatprep.subr.bf16.mxu1 %v1799_v19  ;;  %v1810_v34 = vld [vmem:[#allocation2 + $0xc8] ss:$16 sps:$4 sm:$0xff]   ;;  %v1811_v35 = vld [vmem:[#allocation2 + $0xec] ss:$16 sps:$4 sm:$0xff]   ;;  %v2264_v5 = vshrl.u32 %v408_v4, 7  ;;  %v1911_v10 = vld [vmem:[#allocation6] sm:$0xff]  }
  0x7a   :  { %v1822_v37 = vld [vmem:[#allocation4 + $0x24] ss:$8 sps:$4 sm:$0xff]   ;;  %v1813_v38 = vld [vmem:[#allocation2 + $0xe8] ss:$16 sps:$4 sm:$0xff]   ;;  %v1825_v40 = vld [vmem:[#allocation4 + $0x34] ss:$8 sps:$4 sm:$0xff]  }
  0x7b   :  { %v1820_v39 = vld [vmem:[#allocation4 + $0x20] ss:$8 sps:$4 sm:$0xff]   ;;  %v1823_v41 = vld [vmem:[#allocation4 + $0x30] ss:$8 sps:$4 sm:$0xff]   ;;  %v1828_v42 = vld [vmem:[#allocation4 + $0x44] ss:$8 sps:$4 sm:$0xff]  }
  0x7c   :  { %327 = vmatpush1.bf16.msra.mxu0 %v1777_v8  ;;  %368 = vmatpush1.bf16.msra.mxu1 %v1801_v22  ;;  %v1826_v43 = vld [vmem:[#allocation4 + $0x40] ss:$8 sps:$4 sm:$0xff]   ;;  %v1831_v44 = vld [vmem:[#allocation4 + $0x54] ss:$8 sps:$4 sm:$0xff]   ;;  %v1829_v45 = vld [vmem:[#allocation4 + $0x50] ss:$8 sps:$4 sm:$0xff]  }
  0x7d   :  { %328 = vmatprep.subr.bf16.mxu0 %v1778_v9  ;;  %369 = vmatprep.subr.bf16.mxu1 %v1802_v23  ;;  %v1834_v46 = vld [vmem:[#allocation4 + $0x64] ss:$8 sps:$4 sm:$0xff]   ;;  %v1832_v47 = vld [vmem:[#allocation4 + $0x60] ss:$8 sps:$4 sm:$0xff]   ;;  %v1837_v48 = vld [vmem:[#allocation4 + $0x74] ss:$8 sps:$4 sm:$0xff]  }
  0x7e   :  { %v1835_v49 = vld [vmem:[#allocation4 + $0x70] ss:$8 sps:$4 sm:$0xff]   ;;  %v1840_v50 = vld [vmem:[#allocation4 + $0x84] ss:$8 sps:$4 sm:$0xff]   ;;  %v1838_v51 = vld [vmem:[#allocation4 + $0x80] ss:$8 sps:$4 sm:$0xff]  }
  0x7f   :  { %v1843_v52 = vld [vmem:[#allocation4 + $0x94] ss:$8 sps:$4 sm:$0xff]   ;;  %v1841_v53 = vld [vmem:[#allocation4 + $0x90] ss:$8 sps:$4 sm:$0xff]   ;;  %v1846_v54 = vld [vmem:[#allocation4 + $0xa4] ss:$8 sps:$4 sm:$0xff]  }
  0x80   :  { %329 = vmatpush1.bf16.msra.mxu0 %v1780_v13  ;;  %370 = vmatpush1.bf16.msra.mxu1 %v1804_v26  ;;  %v1844_v55 = vld [vmem:[#allocation4 + $0xa0] ss:$8 sps:$4 sm:$0xff]   ;;  %v1849_v56 = vld [vmem:[#allocation4 + $0xb4] ss:$8 sps:$4 sm:$0xff]   ;;  %v1847_v57 = vld [vmem:[#allocation4 + $0xb0] ss:$8 sps:$4 sm:$0xff]  }
  0x81   :  { %330 = vmatprep.subr.bf16.mxu0 %v1781_v16  ;;  %371 = vmatprep.subr.bf16.mxu1 %v1805_v27  ;;  %v1852_v58 = vld [vmem:[#allocation4 + $0xc4] ss:$8 sps:$4 sm:$0xff]   ;;  %v1850_v59 = vld [vmem:[#allocation4 + $0xc0] ss:$8 sps:$4 sm:$0xff]   ;;  %v1855_v60 = vld [vmem:[#allocation4 + $0xd4] ss:$8 sps:$4 sm:$0xff]  }
  0x82   :  { %v1853_v61 = vld [vmem:[#allocation4 + $0xd0] ss:$8 sps:$4 sm:$0xff]   ;;  %v1858_v62 = vld [vmem:[#allocation4 + $0xe4] ss:$8 sps:$4 sm:$0xff]   ;;  %v1856_v63 = vld [vmem:[#allocation4 + $0xe0] ss:$8 sps:$4 sm:$0xff]  }
  0x83   :  { %v1861_v1 = vld [vmem:[#allocation4 + $0xf4] ss:$8 sps:$4 sm:$0xff]   ;;  %v1859_v2 = vld [vmem:[#allocation4 + $0xf0] ss:$8 sps:$4 sm:$0xff]   ;;  %v1864_v3 = vld [vmem:[#allocation4 + $0x104] ss:$8 sps:$4 sm:$0xff]  }
  0x84   :  { %331 = vmatpush1.bf16.msra.mxu0 %v1783_v17  ;;  %372 = vmatpush1.bf16.msra.mxu1 %v1807_v30  ;;  %v418_v6 = vsub.s32 2, %v2264_v5  ;;  %v406_v7 = vld [vmem:[%s2349_s2] sm:$0xf]  ;;  %v1912_v11 = vld [vmem:[#allocation6 + $0x48] sm:$0xff]   ;;  %v1914_v13 = vld [vmem:[#allocation6 + $0x50] sm:$0xff]   ;;  %v414_v22 = vsub.s32 1, %v2264_v5 }
  0x85   :  { %332 = vmatprep.subr.bf16.mxu0 %v1784_v20  ;;  %373 = vmatprep.subr.bf16.mxu1 %v1808_v31  ;;  %v1910_v9 = vld [vmem:[#allocation6 + $0x40] sm:$0xff]   ;;  %v1913_v12 = vld [vmem:[#allocation6 + $0x8] sm:$0xff]   ;;  %v1915_v14 = vld [vmem:[#allocation6 + $0x10] sm:$0xff]  }
  0x86   :  { %v419_v8 = vrot.slane %v406_v7, %v418_v6  ;;  %v1916_v15 = vld [vmem:[#allocation6 + $0x58] sm:$0xff]   ;;  %v1918_v17 = vld [vmem:[#allocation6 + $0x60] sm:$0xff]   ;;  %v1920_v19 = vld [vmem:[#allocation6 + $0x68] sm:$0xff]  }
  0x87   :  { %v1917_v16 = vld [vmem:[#allocation6 + $0x18] sm:$0xff]   ;;  %v1919_v18 = vld [vmem:[#allocation6 + $0x20] sm:$0xff]   ;;  %v1921_v20 = vld [vmem:[#allocation6 + $0x28] sm:$0xff]  }
  0x88   :  { %333 = vmatpush1.bf16.msra.mxu0 %v1786_v21  ;;  %374 = vmatpush1.bf16.msra.mxu1 %v1810_v34  ;;  %v2271_v21 = vsub.s32 0, %v2264_v5  ;;  %v1879_v4 = vld [vmem:[#allocation4 + $0x154] ss:$8 sps:$4 sm:$0xff]   ;;  %v1877_v6 = vld [vmem:[#allocation4 + $0x150] ss:$8 sps:$4 sm:$0xff]  }
  0x89   :  { %334 = vmatprep.subr.bf16.mxu0 %v1787_v24  ;;  %375 = vmatprep.subr.bf16.mxu1 %v1811_v35  ;;  %v415_v24 = vrot.slane %v406_v7, %v414_v22 }
  0x8a   :  { %v411_v23 = vrot.slane %v406_v7, %v2271_v21 }
  0x8b   :  { %v429_v26 = vpack.c.bf16 %v415_v24, %v415_v24  ;;  %v1901_v24 = vld [vmem:[#allocation4 + $0x1d0] ss:$8 sps:$4 sm:$0xff]  }
  0x8c   :  { %335 = vmatpush1.bf16.msra.mxu0 %v1789_v25  ;;  %376 = vmatpush1.bf16.msra.mxu1 %v1813_v38  ;;  %v428_v25 = vpack.c.bf16 %v411_v23, %v411_v23  ;;  %v430_v38 = vpack.c.bf16 %v419_v8, %v419_v8  ;;  %v1880_v8 = vld [vmem:[#allocation4 + $0x160] ss:$8 sps:$4 sm:$0xff]   ;;  %v1903_v23 = vld [vmem:[#allocation4 + $0x1d4] ss:$8 sps:$4 sm:$0xff]  }
  0x8d   :  { %852 = vmatprep.subr.bf16.mxu0 %v1816_v28  ;;  %1638 = vmatprep.subr.bf16.mxu1 %v1910_v9  ;;  %v422_v28 = vsub.s32 3, %v2264_v5  ;;  %v1885_v9 = vld [vmem:[#allocation4 + $0x174] ss:$8 sps:$4 sm:$0xff]   ;;  %v1926_v5 = vld [vmem:[#allocation7] sm:$0xff]  }
  0x8e   :  { %v433_v27 = vpack.i.b16 %v428_v25, %v428_v25  ;;  %v1906_v25 = vld [vmem:[#allocation4 + $0x1e4] ss:$8 sps:$4 sm:$0xff]  }
  0x8f   :  { %353 = vmatmul.mubr.bf16.vlgmr.msra.gmra.mrb[0].mxu0 %v127_v29  ;;  %394 = vmatmul.mubr.bf16.vlgmr.msra.gmra.mrb[0].mxu1 %v127_v29  ;;  %v440_v29 = vpack.i.b16 %v429_v26, %v429_v26  ;;  %v423_v31 = vrot.slane %v406_v7, %v422_v28  ;;  %v1882_v7 = vld [vmem:[#allocation4 + $0x164] ss:$8 sps:$4 sm:$0xff]   ;;  %v1904_v26 = vld [vmem:[#allocation4 + $0x1e0] ss:$8 sps:$4 sm:$0xff]   ;;  %v1907_v28 = vld [vmem:[#allocation4 + $0x1f0] ss:$8 sps:$4 sm:$0xff]  }
  0x90   :  { %853 = vmatpush1.bf16.msra.mxu0 %v1814_v32  ;;  %1639 = vmatpush3.bf16.msra.mxu1 %v1911_v10  ;;  %v438_v30 = vrot.slane %v433_v27, %v2271_v21  ;;  %v1883_v10 = vld [vmem:[#allocation4 + $0x170] ss:$8 sps:$4 sm:$0xff]   ;;  %v1909_v27 = vld [vmem:[#allocation4 + $0x1f4] ss:$8 sps:$4 sm:$0xff]  }
  0x91   :  { %854 = vmatprep.subr.bf16.mxu0 %v1819_v33  ;;  %1640 = vmatprep.subr.bf16.mxu1 %v1912_v11  ;;  %v445_v33 = vrot.slane %v440_v29, %v2271_v21  ;;  %v1888_v11 = vld [vmem:[#allocation4 + $0x184] ss:$8 sps:$4 sm:$0xff]  }
  0x94   :  { %855 = vmatpush1.bf16.msra.mxu0 %v1817_v36  ;;  %1641 = vmatpush3.bf16.msra.mxu1 %v1913_v12  ;;  %v1886_v12 = vld [vmem:[#allocation4 + $0x180] ss:$8 sps:$4 sm:$0xff]  }
  0x95   :  { %856 = vmatprep.subr.bf16.mxu0 %v1822_v37  ;;  %1642 = vmatprep.subr.bf16.mxu1 %v1914_v13  ;;  %v1891_v13 = vld [vmem:[#allocation4 + $0x194] ss:$8 sps:$4 sm:$0xff]  }
  0x98   :  { %857 = vmatpush1.bf16.msra.mxu0 %v1820_v39  ;;  %1643 = vmatpush3.bf16.msra.mxu1 %v1915_v14  ;;  %v1889_v14 = vld [vmem:[#allocation4 + $0x190] ss:$8 sps:$4 sm:$0xff]  }
  0x99   :  { %858 = vmatprep.subr.bf16.mxu0 %v1825_v40  ;;  %1644 = vmatprep.subr.bf16.mxu1 %v1916_v15  ;;  %v1894_v15 = vld [vmem:[#allocation4 + $0x1a4] ss:$8 sps:$4 sm:$0xff]  }
  0x9c   :  { %859 = vmatpush1.bf16.msra.mxu0 %v1823_v41  ;;  %1645 = vmatpush3.bf16.msra.mxu1 %v1917_v16  ;;  %v431_v41 = vpack.c.bf16 %v423_v31, %v423_v31  ;;  %v1892_v16 = vld [vmem:[#allocation4 + $0x1a0] ss:$8 sps:$4 sm:$0xff]   ;;  %v1923_v31 = vld [vmem:[#allocation6 + $0x30] sm:$0xff]  }
  0x9d   :  { %860 = vmatprep.subr.bf16.mxu0 %v1828_v42  ;;  %1646 = vmatprep.subr.bf16.mxu1 %v1918_v17  ;;  %v1897_v17 = vld [vmem:[#allocation4 + $0x1b4] ss:$8 sps:$4 sm:$0xff]  }
  0xa0   :  { %861 = vmatpush1.bf16.msra.mxu0 %v1826_v43  ;;  %1647 = vmatpush3.bf16.msra.mxu1 %v1919_v18  ;;  %v1895_v18 = vld [vmem:[#allocation4 + $0x1b0] ss:$8 sps:$4 sm:$0xff]  }
  0xa1   :  { %862 = vmatprep.subr.bf16.mxu0 %v1831_v44  ;;  %1648 = vmatprep.subr.bf16.mxu1 %v1920_v19  ;;  %v1862_v44 = vld [vmem:[#allocation4 + $0x100] ss:$8 sps:$4 sm:$0xff]   ;;  %v1900_v19 = vld [vmem:[#allocation4 + $0x1c4] ss:$8 sps:$4 sm:$0xff]  }
  0xa4   :  { %863 = vmatpush1.bf16.msra.mxu0 %v1829_v45  ;;  %1649 = vmatpush3.bf16.msra.mxu1 %v1921_v20  ;;  %v447_v45 = vpack.i.b16 %v430_v38, %v430_v38  ;;  %v1898_v20 = vld [vmem:[#allocation4 + $0x1c0] ss:$8 sps:$4 sm:$0xff]  }
  0xa5   :  { %864 = vmatprep.subr.bf16.mxu0 %v1834_v46 }
  0xa8   :  { %865 = vmatpush1.bf16.msra.mxu0 %v1832_v47  ;;  %v1867_v47 = vld [vmem:[#allocation4 + $0x114] ss:$8 sps:$4 sm:$0xff]  }
  0xa9   :  { %866 = vmatprep.subr.bf16.mxu0 %v1837_v48  ;;  %v454_v48 = vpack.i.b16 %v431_v41, %v431_v41 }
  0xac   :  { %867 = vmatpush1.bf16.msra.mxu0 %v1835_v49  ;;  %v1865_v49 = vld [vmem:[#allocation4 + $0x110] ss:$8 sps:$4 sm:$0xff]  }
  0xad   :  { %868 = vmatprep.subr.bf16.mxu0 %v1840_v50  ;;  %v452_v50 = vrot.slane %v447_v45, %v2271_v21 }
  0xb0   :  { %869 = vmatpush1.bf16.msra.mxu0 %v1838_v51  ;;  %v1870_v51 = vld [vmem:[#allocation4 + $0x124] ss:$8 sps:$4 sm:$0xff]  }
  0xb1   :  { %870 = vmatprep.subr.bf16.mxu0 %v1843_v52 }
  0xb4   :  { %871 = vmatpush1.bf16.msra.mxu0 %v1841_v53  ;;  %v459_v53 = vrot.slane %v454_v48, %v2271_v21 }
  0xb5   :  { %872 = vmatprep.subr.bf16.mxu0 %v1846_v54 }
  0xb8   :  { %873 = vmatpush1.bf16.msra.mxu0 %v1844_v55 }
  0xb9   :  { %874 = vmatprep.subr.bf16.mxu0 %v1849_v56 }
  0xbc   :  { %875 = vmatpush1.bf16.msra.mxu0 %v1847_v57 }
  0xbd   :  { %876 = vmatprep.subr.bf16.mxu0 %v1852_v58  ;;  %v1868_v58 = vld [vmem:[#allocation4 + $0x120] ss:$8 sps:$4 sm:$0xff]  }
  0xc0   :  { %877 = vmatpush1.bf16.msra.mxu0 %v1850_v59 }
  0xc1   :  { %878 = vmatprep.subr.bf16.mxu0 %v1855_v60 }
  0xc4   :  { %879 = vmatpush1.bf16.msra.mxu0 %v1853_v61  ;;  %v1873_v61 = vld [vmem:[#allocation4 + $0x134] ss:$8 sps:$4 sm:$0xff]  }
  0xc5   :  { %880 = vmatprep.subr.bf16.mxu0 %v1858_v62 }
  0xc8   :  { %881 = vmatpush1.bf16.msra.mxu0 %v1856_v63 }
  0xc9   :  { %882 = vmatprep.subr.bf16.mxu0 %v1861_v1  ;;  %v1871_v1 = vld [vmem:[#allocation4 + $0x130] ss:$8 sps:$4 sm:$0xff]  }
  0xcc   :  { %883 = vmatpush1.bf16.msra.mxu0 %v1859_v2  ;;  %v1876_v2 = vld [vmem:[#allocation4 + $0x144] ss:$8 sps:$4 sm:$0xff]  }
  0xcd   :  { %893 = vmatprep.subr.bf16.mxu0 %v1864_v3  ;;  %v1874_v3 = vld [vmem:[#allocation4 + $0x140] ss:$8 sps:$4 sm:$0xff]  }
 0x162   :  { %v354_v32 = vpop.f32.mrb[0].mxu0  ;;  %v395_v52 = vpop.f32.mrb[0].mxu1 }
 0x163   :  { %v402_v34 = vpack.c.bf16 %v354_v32, %v354_v32  ;;  %v356_v35 = vpop.f32.mrb[1].mxu0  ;;  %v404_v54 = vpack.c.bf16 %v395_v52, %v395_v52  ;;  %v397_v55 = vpop.f32.mrb[1].mxu1  ;;  %v1924_v32 = vld [vmem:[#allocation6 + $0x78] sm:$0xff]  }
 0x164   :  { %v403_v36 = vpack.c.bf16 %v356_v35, %v356_v35  ;;  %v358_v37 = vpop.f32.mrb[2].mxu0  ;;  %v405_v56 = vpack.c.bf16 %v397_v55, %v397_v55  ;;  %v399_v57 = vpop.f32.mrb[2].mxu1  ;;  %v936_v35 = vld [vmem:[%s2351_s4] sm:$0x3]  ;;  %v1929_v55 = vld [vmem:[#allocation7 + $0x18] sm:$0xff]  }
 0x165   :  { %v460_v39 = vadd.bf16 %v438_v30, %v402_v34  ;;  %v359_v40 = vpop.f32.mrb[3].mxu0  ;;  %v462_v59 = vadd.bf16 %v452_v50, %v404_v54  ;;  %v400_v60 = vpop.f32.mrb[3].mxu1  ;;  %v1922_v30 = vld [vmem:[#allocation6 + $0x70] sm:$0xff]   ;;  %v2103_v34 = vmov 0.0   ;;  %v945_v37 = vrot.slane %v936_v35, %v414_v22  ;;  %v1931_v57 = vld [vmem:[#allocation7 + $0x28] sm:$0xff]  }
 0x166   :  { %v461_v42 = vadd.bf16 %v445_v33, %v403_v36  ;;  %v463_v62 = vadd.bf16 %v459_v53, %v405_v56  ;;  %1650 = vmatprep.subr.bf16.mxu1 %v1922_v30  ;;  %v1925_v33 = vld [vmem:[#allocation6 + $0x38] sm:$0xff]   ;;  %v941_v36 = vrot.slane %v936_v35, %v2271_v21  ;;  %v1927_v53 = vld [vmem:[#allocation7 + $0x8] sm:$0xff]   ;;  %v1928_v54 = vld [vmem:[#allocation7 + $0x10] sm:$0xff]  }
 0x167   :  { %v464_v46 = vmax.bf16 %v2102_v0, %v460_v39  ;;  %v466_v29 = vmax.bf16 %v2102_v0, %v462_v59  ;;  %1651 = vmatpush3.bf16.msra.mxu1 %v1923_v31  ;;  %v949_v39 = vpack.c.bf16 %v945_v37, %v945_v37  ;;  %v1930_v56 = vld [vmem:[#allocation7 + $0x20] sm:$0xff]   ;;  %v1933_v59 = vld [vmem:[#allocation7 + $0x38] sm:$0xff]   ;;  %v1947_v37 = vld [vmem:[#allocation10 + $0x28] sm:$0xff]  }
 0x168   :  { %v465_v43 = vmax.bf16 %v2102_v0, %v461_v42  ;;  %v467_v63 = vmax.bf16 %v2102_v0, %v463_v62  ;;  %1652 = vmatprep.subr.bf16.mxu1 %v1924_v32  ;;  %v948_v38 = vpack.c.bf16 %v941_v36, %v941_v36  ;;  %v1137_v60 = vld [vmem:[%s2353_s6] sm:$0x1]  ;;  %v1943_v32 = vld [vmem:[#allocation10 + $0x8] sm:$0xff]   ;;  %v1945_v35 = vld [vmem:[#allocation10 + $0x18] sm:$0xff]  }
 0x169   :  { %v958_v41 = vpack.i.b16 %v949_v39, %v949_v39  ;;  %v1942_v30 = vld [vmem:[#allocation10] sm:$0xff]   ;;  %v1949_v39 = vld [vmem:[#allocation10 + $0x38] sm:$0xff]  }
 0x16a   :  { %884 = vmatprep.mubr.bf16.mxu0 %v465_v43  ;;  %v951_v40 = vpack.i.b16 %v948_v38, %v948_v38  ;;  %v1946_v36 = vld [vmem:[#allocation10 + $0x20] sm:$0xff]   ;;  %v1948_v38 = vld [vmem:[#allocation10 + $0x30] sm:$0xff]  }
 0x16b   :  { %885 = vmatmul.mubr.bf16.vlgmr.msra.gmra.mrb[4].mxu0 %v464_v46  ;;  %1653 = vmatpush3.bf16.msra.mxu1 %v1925_v33  ;;  %v1944_v33 = vld [vmem:[#allocation10 + $0x10] sm:$0xff]  }
 0x16c   :  { %894 = vmatpush1.bf16.msra.mxu0 %v1862_v44  ;;  %925 = vmatprep.mubr.bf16.mxu0 %v467_v63  ;;  %v956_v42 = vrot.slane %v951_v40, %v2271_v21  ;;  %v963_v44 = vrot.slane %v958_v41, %v2271_v21  ;;  %v1369_v40 = vld [vmem:[%s2357_s10] sm:$0x1] }
 0x16d   :  { %895 = vmatprep.subr.bf16.mxu0 %v1867_v47  ;;  %1687 = vmatprep.subr.bf16.mxu1 %v2103_v34  ;;  %v1370_v41 = vpack.c.bf16 %v1369_v40, %v1369_v40 }
 0x170   :  { %896 = vmatpush1.bf16.msra.mxu0 %v1865_v49 }
 0x171   :  { %897 = vmatprep.subr.bf16.mxu0 %v1870_v51 }
 0x174   :  { %898 = vmatpush1.bf16.msra.mxu0 %v1868_v58  ;;  %v1932_v58 = vld [vmem:[#allocation7 + $0x30] sm:$0xff]  }
 0x175   :  { %899 = vmatprep.subr.bf16.mxu0 %v1873_v61  ;;  %v1138_v61 = vpack.c.bf16 %v1137_v60, %v1137_v60 }
 0x177   :  { %v1140_v62 = vpack.i.b16 %v1138_v61, %v1138_v61 }
 0x178   :  { %900 = vmatpush1.bf16.msra.mxu0 %v1871_v1 }
 0x179   :  { %901 = vmatprep.subr.bf16.mxu0 %v1876_v2 }
 0x17c   :  { %902 = vmatpush1.bf16.msra.mxu0 %v1874_v3  ;;  %v1145_v3 = vrot.slane %v1140_v62, %v2271_v21 }
 0x17d   :  { %903 = vmatprep.subr.bf16.mxu0 %v1879_v4 }
 0x180   :  { %904 = vmatpush1.bf16.msra.mxu0 %v1877_v6 }
 0x181   :  { %905 = vmatprep.subr.bf16.mxu0 %v1882_v7 }
 0x184   :  { %906 = vmatpush1.bf16.msra.mxu0 %v1880_v8 }
 0x185   :  { %907 = vmatprep.subr.bf16.mxu0 %v1885_v9  ;;  %v1934_v9 = vld [vmem:[#allocation9] sm:$0xff]  }
 0x188   :  { %908 = vmatpush1.bf16.msra.mxu0 %v1883_v10 }
 0x189   :  { %909 = vmatprep.subr.bf16.mxu0 %v1888_v11  ;;  %v1935_v11 = vld [vmem:[#allocation9 + $0x8] sm:$0xff]  }
 0x18c   :  { %910 = vmatpush1.bf16.msra.mxu0 %v1886_v12  ;;  %v1936_v12 = vld [vmem:[#allocation9 + $0x10] sm:$0xff]  }
 0x18d   :  { %911 = vmatprep.subr.bf16.mxu0 %v1891_v13  ;;  %v1937_v13 = vld [vmem:[#allocation9 + $0x18] sm:$0xff]  }
 0x190   :  { %912 = vmatpush1.bf16.msra.mxu0 %v1889_v14  ;;  %v1938_v14 = vld [vmem:[#allocation9 + $0x20] sm:$0xff]  }
 0x191   :  { %913 = vmatprep.subr.bf16.mxu0 %v1894_v15  ;;  %v1939_v15 = vld [vmem:[#allocation9 + $0x28] sm:$0xff]  }
 0x194   :  { %914 = vmatpush1.bf16.msra.mxu0 %v1892_v16  ;;  %v1940_v16 = vld [vmem:[#allocation9 + $0x30] sm:$0xff]  }
 0x195   :  { %915 = vmatprep.subr.bf16.mxu0 %v1897_v17  ;;  %v1941_v17 = vld [vmem:[#allocation9 + $0x38] sm:$0xff]  }
 0x198   :  { %916 = vmatpush1.bf16.msra.mxu0 %v1895_v18  ;;  %v1253_v18 = vld [vmem:[%s2355_s8] sm:$0x1] }
 0x199   :  { %917 = vmatprep.subr.bf16.mxu0 %v1900_v19  ;;  %v1254_v19 = vpack.c.bf16 %v1253_v18, %v1253_v18 }
 0x19c   :  { %918 = vmatpush1.bf16.msra.mxu0 %v1898_v20  ;;  %v1256_v20 = vpack.i.b16 %v1254_v19, %v1254_v19 }
 0x19d   :  { %919 = vmatprep.subr.bf16.mxu0 %v1903_v23 }
 0x19e   :  { %v1261_v23 = vrot.slane %v1256_v20, %v2271_v21 }
 0x1a0   :  { %920 = vmatpush1.bf16.msra.mxu0 %v1901_v24 }
 0x1a1   :  { %921 = vmatprep.subr.bf16.mxu0 %v1906_v25 }
 0x1a4   :  { %922 = vmatpush1.bf16.msra.mxu0 %v1904_v26 }
 0x1a5   :  { %923 = vmatprep.subr.bf16.mxu0 %v1909_v27 }
 0x1a8   :  { %924 = vmatpush1.bf16.msra.mxu0 %v1907_v28 }
 0x1ab   :  { %926 = vmatmul.mubr.bf16.vlgmr.msra.gmra.mrb[4].mxu0 %v466_v29 }
 0x27e   :  { %v927_v43 = vpop.f32.mrb[4].mxu0 }
 0x27f   :  { %v934_v45 = vpack.c.bf16 %v927_v43, %v927_v43  ;;  %v929_v46 = vpop.f32.mrb[5].mxu0 }
 0x280   :  { %v935_v47 = vpack.c.bf16 %v929_v46, %v929_v46  ;;  %v931_v48 = vpop.f32.mrb[6].mxu0 }
 0x281   :  { %v964_v49 = vadd.bf16 %v956_v42, %v934_v45  ;;  %v932_v50 = vpop.f32.mrb[7].mxu0  ;;  %v1372_v42 = vpack.i.b16 %v1370_v41, %v1370_v41 }
 0x282   :  { %v965_v51 = vadd.bf16 %v963_v44, %v935_v47 }
 0x283   :  { %v966_v22 = vmax.bf16 %v2102_v0, %v964_v49  ;;  %v1377_v43 = vrot.slane %v1372_v42, %v2271_v21 }
 0x284   :  { %v967_v52 = vmax.bf16 %v2102_v0, %v965_v51 }
 0x286   :  { %1128 = vmatprep.mubr.bf16.mxu1 %v967_v52 }
 0x287   :  { %1129 = vmatmul.mubr.bf16.vlgmr.msra.gmra.mrb[4].mxu1 %v966_v22 }
 0x288   :  { %1688 = vmatpush3.bf16.msra.mxu1 %v1926_v5  ;;  %1703 = vmatprep.mubr.msk.bf16.mxu1 %vm2104_vm0, %v2103_v34 }
 0x289   :  { %1689 = vmatprep.subr.bf16.mxu1 %v2103_v34 }
 0x28c   :  { %1690 = vmatpush3.bf16.msra.mxu1 %v1927_v53 }
 0x28d   :  { %1691 = vmatprep.subr.bf16.mxu1 %v2103_v34 }
 0x290   :  { %1692 = vmatpush3.bf16.msra.mxu1 %v1928_v54 }
 0x291   :  { %1693 = vmatprep.subr.bf16.mxu1 %v2103_v34 }
 0x294   :  { %1694 = vmatpush3.bf16.msra.mxu1 %v1929_v55 }
 0x295   :  { %1695 = vmatprep.subr.bf16.mxu1 %v2103_v34 }
 0x298   :  { %1696 = vmatpush3.bf16.msra.mxu1 %v1930_v56 }
 0x299   :  { %1697 = vmatprep.subr.bf16.mxu1 %v2103_v34 }
 0x29c   :  { %1698 = vmatpush3.bf16.msra.mxu1 %v1931_v57 }
 0x29d   :  { %1699 = vmatprep.subr.bf16.mxu1 %v2103_v34 }
 0x2a0   :  { %1700 = vmatpush3.bf16.msra.mxu1 %v1932_v58 }
 0x2a1   :  { %1701 = vmatprep.subr.bf16.mxu1 %v2103_v34 }
 0x2a4   :  { %1702 = vmatpush3.bf16.msra.mxu1 %v1933_v59 }
 0x2a5   :  { %1707 = vmatprep.subr.bf16.mxu1 %v2103_v34 }
 0x35a   :  { %v1654_v63 = vpop.f32.mrb[4].mxu1 }
 0x35b   :  { %v1655_v1 = vpop.f32.mrb[5].mxu1 }
 0x35c   :  { %v1656_v2 = vadd.f32 %v1655_v1, %v1654_v63  ;;  %v1657_v4 = vpop.f32.mrb[6].mxu1 }
 0x35d   :  { %v1658_v6 = vpop.f32.mrb[7].mxu1 }
 0x35e   :  { %v1136_v7 = vpack.c.bf16 %v1656_v2, %v1656_v2 }
 0x360   :  { %v1146_v8 = vadd.bf16 %v1145_v3, %v1136_v7 }
 0x362   :  { %v1147_v10 = vmax.bf16 %v2102_v0, %v1146_v8 }
 0x364   :  { %1704 = vmatmul.mubr.bf16.vlgmr.msra.gmra.mrb[8].mxu1 %v1147_v10 }
 0x365   :  { %1708 = vmatpush3.bf16.msra.mxu1 %v1934_v9  ;;  %1723 = vmatprep.mubr.msk.bf16.mxu1 %vm2104_vm0, %v2103_v34 }
 0x366   :  { %1709 = vmatprep.subr.bf16.mxu1 %v2103_v34 }
 0x369   :  { %1710 = vmatpush3.bf16.msra.mxu1 %v1935_v11 }
 0x36a   :  { %1711 = vmatprep.subr.bf16.mxu1 %v2103_v34 }
 0x36d   :  { %1712 = vmatpush3.bf16.msra.mxu1 %v1936_v12 }
 0x36e   :  { %1713 = vmatprep.subr.bf16.mxu1 %v2103_v34 }
 0x371   :  { %1714 = vmatpush3.bf16.msra.mxu1 %v1937_v13 }
 0x372   :  { %1715 = vmatprep.subr.bf16.mxu1 %v2103_v34 }
 0x375   :  { %1716 = vmatpush3.bf16.msra.mxu1 %v1938_v14 }
 0x376   :  { %1717 = vmatprep.subr.bf16.mxu1 %v2103_v34 }
 0x379   :  { %1718 = vmatpush3.bf16.msra.mxu1 %v1939_v15 }
 0x37a   :  { %1719 = vmatprep.subr.bf16.mxu1 %v2103_v34 }
 0x37d   :  { %1720 = vmatpush3.bf16.msra.mxu1 %v1940_v16 }
 0x37e   :  { %1721 = vmatprep.subr.bf16.mxu1 %v2103_v34 }
 0x381   :  { %1722 = vmatpush3.bf16.msra.mxu1 %v1941_v17 }
 0x382   :  { %1727 = vmatprep.subr.bf16.mxu1 %v2103_v34 }
 0x437   :  { %v1246_v24 = vpop.f32.mrb[8].mxu1 }
 0x438   :  { %v1252_v25 = vpack.c.bf16 %v1246_v24, %v1246_v24  ;;  %v1705_v26 = vpop.f32.mrb[9].mxu1 }
 0x439   :  { %v1249_v27 = vpop.f32.mrb[10].mxu1 }
 0x43a   :  { %v1262_v28 = vadd.bf16 %v1261_v23, %v1252_v25  ;;  %v1706_v29 = vpop.f32.mrb[11].mxu1 }
 0x43c   :  { %v1263_v31 = vmax.bf16 %v2102_v0, %v1262_v28 }
 0x43e   :  { %1724 = vmatmul.mubr.bf16.vlgmr.msra.gmra.mrb[12].mxu1 %v1263_v31 }
 0x43f   :  { %1728 = vmatpush3.bf16.msra.mxu1 %v1942_v30  ;;  %1743 = vmatprep.mubr.msk.bf16.mxu1 %vm2104_vm0, %v2103_v34 }
 0x440   :  { %1729 = vmatprep.subr.bf16.mxu1 %v2103_v34 }
 0x443   :  { %1730 = vmatpush3.bf16.msra.mxu1 %v1943_v32 }
 0x444   :  { %1731 = vmatprep.subr.bf16.mxu1 %v2103_v34 }
 0x447   :  { %1732 = vmatpush3.bf16.msra.mxu1 %v1944_v33 }
 0x448   :  { %1733 = vmatprep.subr.bf16.mxu1 %v2103_v34 }
 0x44b   :  { %1734 = vmatpush3.bf16.msra.mxu1 %v1945_v35 }
 0x44c   :  { %1735 = vmatprep.subr.bf16.mxu1 %v2103_v34 }
 0x44f   :  { %1736 = vmatpush3.bf16.msra.mxu1 %v1946_v36 }
 0x450   :  { %1737 = vmatprep.subr.bf16.mxu1 %v2103_v34 }
 0x453   :  { %1738 = vmatpush3.bf16.msra.mxu1 %v1947_v37 }
 0x454   :  { %1739 = vmatprep.subr.bf16.mxu1 %v2103_v34 }
 0x457   :  { %1740 = vmatpush3.bf16.msra.mxu1 %v1948_v38 }
 0x458   :  { %1741 = vmatprep.subr.bf16.mxu1 %v2103_v34  ;;  %v1629_v34 = vld [vmem:[%s2359_s12] ss:$0 sm:$0xff] }
 0x45b   :  { %1742 = vmatpush3.bf16.msra.mxu1 %v1949_v39 }
 0x511   :  { %v1362_v44 = vpop.f32.mrb[12].mxu1 }
 0x512   :  { %v1368_v45 = vpack.c.bf16 %v1362_v44, %v1362_v44  ;;  %v1725_v46 = vpop.f32.mrb[13].mxu1 }
 0x513   :  { %v1365_v47 = vpop.f32.mrb[14].mxu1 }
 0x514   :  { %v1378_v48 = vadd.bf16 %v1377_v43, %v1368_v45  ;;  %v1726_v49 = vpop.f32.mrb[15].mxu1 }
 0x516   :  { %v1379_v50 = vmax.bf16 %v2102_v0, %v1378_v48 }
 0x518   :  { %1744 = vmatmul.mubr.bf16.vlgmr.msra.gmra.mrb[16].mxu1 %v1379_v50 }
 0x5eb   :  { %v1485_v51 = vpop.f32.mrb[16].mxu1 }
 0x5ec   :  { %v1486_v52 = vadd.f32 %v1629_v34, %v1485_v51  ;;  %v1745_v5 = vpop.f32.mrb[17].mxu1 }
 0x5ed   :  { %v1488_v22 = vpop.f32.mrb[18].mxu1 }
 0x5ee   :  { %v1491_v53 = vpack.c.bf16 %v1486_v52, %v1486_v52  ;;  %v1746_v54 = vpop.f32.mrb[19].mxu1 }
 0x5f0   :  { %1492 = vst [vmem:[%s2360_s13] sm:$0xf] %v1491_v53 }
 0x5f1   :  { %1497 = vsyncpa [#allocation3], 1 }
 0x5f2   :  { %1498 = vsyncpa [#allocation5], 1 }
 0x5f3   :  { %1499 = vsyncpa [#allocation8], 1 }
 0x5f4   :  { %1500 = vsyncpa [#allocation11], 1 }

</bundles_post_ra>
